<compile_context>
chip_gen: v5e
topology: v5e:2x2
jax: 0.10.0
libtpu: 0.0.40
codegen_flags: <defaults>
</compile_context>

<pallas_src>
import functools

import numpy as np
import jax
import jax.numpy as jnp
from jax.experimental import pallas as pl
from jax.experimental.pallas import tpu as pltpu


def _spd_vectorize_kernel(x_ref, o_ref, *, n):
    # x_ref: (B_blk, n, n)   block of input SPD matrices
    # o_ref: (B_blk, L)      packed upper-triangular output, L = n*(n+1)//2
    #
    # torch.triu_indices order is row-major: row i contributes columns i..n-1,
    # placed contiguously at offset sum_{j<i}(n - j).  All offsets and lengths
    # are static, so this unrolls into n slice copies (VPU/vst only).
    x = x_ref[...]                               # one load of the whole block
    off = 0
    for i in range(n):
        seg = n - i
        o_ref[:, off:off + seg] = x[:, i, i:]    # (B_blk, seg) static slice
        off += seg


def spd_vectorize(x, *, block_b=256, vmem_budget_bytes=8 << 20):
    """x: (B, n, n) -> (B, n*(n+1)//2), upper-triangular vectorization."""
    B, n, n2 = x.shape
    assert n == n2, "expected square matrices"
    L = n * (n + 1) // 2

    # Per-block VMEM bytes (input tile + output tile), double-buffered by the
    # pipeline.  Shrink the batch block if matrices are large.
    itemsize = jnp.dtype(x.dtype).itemsize
    per_row_bytes = (n * n + L) * itemsize * 2
    max_b = max(8, vmem_budget_bytes // max(per_row_bytes, 1))
    b_cap = min(block_b, int(max_b))
    # Keep the block batch dim a multiple of 8 when it is not the full batch.
    b_cap = max(8, (b_cap // 8) * 8)
    b_blk = B if B <= b_cap else b_cap
    grid = (pl.cdiv(B, b_blk),)

    kernel = functools.partial(_spd_vectorize_kernel, n=n)

    return pl.pallas_call(
        kernel,
        out_shape=jax.ShapeDtypeStruct((B, L), x.dtype),
        grid_spec=pltpu.PrefetchScalarGridSpec(
            num_scalar_prefetch=0,
            grid=grid,
            in_specs=[
                # (b_blk, n, n): last two dims equal the full matrix dims, so
                # the (8,128) divisibility constraint is satisfied trivially.
                pl.BlockSpec((b_blk, n, n), lambda b: (b, 0, 0)),
            ],
            # (b_blk, L): last dim is the full packed length -> dense writeback.
            out_specs=pl.BlockSpec((b_blk, L), lambda b: (b, 0)),
        ),
        compiler_params=pltpu.CompilerParams(
            # Batch axis is embarrassingly parallel; lets v7x split it across
            # its two TensorCores (no-op on v5e/v6e).
            dimension_semantics=("parallel",),
        ),
    )(x)


if __name__ == "__main__":
    B, n = 2, 16
    L = n * (n + 1) // 2

    key = jax.random.PRNGKey(0)
    a = jax.random.normal(key, (B, n, n), dtype=jnp.float32)
    # Symmetric (SPD-ish) inputs, matching typical usage of this module.
    x = a @ jnp.swapaxes(a, 1, 2)

    out = spd_vectorize(x)
    out = jax.block_until_ready(out)

    # Pure-JAX reference: same row-major triu gather as torch.triu_indices.
    rows, cols = np.triu_indices(n)
    ref = x[:, rows, cols]

    assert out.shape == (B, L)
    # Pure copy kernel -> should be bit-exact.
    assert jnp.allclose(out, ref, atol=0.0, rtol=0.0)

    print("KERNEL_OK")
</pallas_src>

<mosaic_0001>
module attributes {stable_mosaic.version = 11 : i64} {
  func.func @_spd_vectorize_kernel(%arg0: i32, %arg1: memref<2x16x16xf32, #tpu.memory_space<vmem>>, %arg2: memref<2x136xf32, #tpu.memory_space<vmem>>) attributes {dimension_semantics = [#tpu.dimension_semantics<parallel>], iteration_bounds = array<i64: 1>, scalar_prefetch = 0 : i64, scratch_operands = 0 : i64, tpu.core_type = #tpu.core_type<tc>, window_params = [{transform_indices = @transform_0, window_bounds = array<i64: 2, 16, 16>}, {transform_indices = @transform_1, window_bounds = array<i64: 2, 136>}]} {
    %c0 = arith.constant 0 : index
    %c0_0 = arith.constant 0 : index
    %c0_1 = arith.constant 0 : index
    %0 = vector.load %arg1[%c0, %c0_0, %c0_1] : memref<2x16x16xf32, #tpu.memory_space<vmem>>, vector<2x16x16xf32>
    %1 = vector.extract_strided_slice %0 {offsets = [0, 0, 0], sizes = [2, 1, 16], strides = [1, 1, 1]} : vector<2x16x16xf32> to vector<2x1x16xf32>
    %2 = vector.shape_cast %1 : vector<2x1x16xf32> to vector<2x16xf32>
    %c0_2 = arith.constant 0 : index
    %c0_3 = arith.constant 0 : index
    %3 = vector.load %arg2[%c0_2, %c0_3] : memref<2x136xf32, #tpu.memory_space<vmem>>, vector<2x16xf32>
    tpu.vector_store %arg2[%c0_2, %c0_3], %2 {strides = array<i32>} : memref<2x136xf32, #tpu.memory_space<vmem>>, vector<2x16xf32>,
    %4 = vector.extract_strided_slice %0 {offsets = [0, 1, 1], sizes = [2, 1, 15], strides = [1, 1, 1]} : vector<2x16x16xf32> to vector<2x1x15xf32>
    %5 = vector.shape_cast %4 : vector<2x1x15xf32> to vector<2x15xf32>
    %c0_4 = arith.constant 0 : index
    %c16 = arith.constant 16 : index
    %6 = vector.load %arg2[%c0_4, %c16] : memref<2x136xf32, #tpu.memory_space<vmem>>, vector<2x15xf32>
    tpu.vector_store %arg2[%c0_4, %c16], %5 {strides = array<i32>} : memref<2x136xf32, #tpu.memory_space<vmem>>, vector<2x15xf32>,
    %7 = vector.extract_strided_slice %0 {offsets = [0, 2, 2], sizes = [2, 1, 14], strides = [1, 1, 1]} : vector<2x16x16xf32> to vector<2x1x14xf32>
    %8 = vector.shape_cast %7 : vector<2x1x14xf32> to vector<2x14xf32>
    %c0_5 = arith.constant 0 : index
    %c31 = arith.constant 31 : index
    %9 = vector.load %arg2[%c0_5, %c31] : memref<2x136xf32, #tpu.memory_space<vmem>>, vector<2x14xf32>
    tpu.vector_store %arg2[%c0_5, %c31], %8 {strides = array<i32>} : memref<2x136xf32, #tpu.memory_space<vmem>>, vector<2x14xf32>,
    %10 = vector.extract_strided_slice %0 {offsets = [0, 3, 3], sizes = [2, 1, 13], strides = [1, 1, 1]} : vector<2x16x16xf32> to vector<2x1x13xf32>
    %11 = vector.shape_cast %10 : vector<2x1x13xf32> to vector<2x13xf32>
    %c0_6 = arith.constant 0 : index
    %c45 = arith.constant 45 : index
    %12 = vector.load %arg2[%c0_6, %c45] : memref<2x136xf32, #tpu.memory_space<vmem>>, vector<2x13xf32>
    tpu.vector_store %arg2[%c0_6, %c45], %11 {strides = array<i32>} : memref<2x136xf32, #tpu.memory_space<vmem>>, vector<2x13xf32>,
    %13 = vector.extract_strided_slice %0 {offsets = [0, 4, 4], sizes = [2, 1, 12], strides = [1, 1, 1]} : vector<2x16x16xf32> to vector<2x1x12xf32>
    %14 = vector.shape_cast %13 : vector<2x1x12xf32> to vector<2x12xf32>
    %c0_7 = arith.constant 0 : index
    %c58 = arith.constant 58 : index
    %15 = vector.load %arg2[%c0_7, %c58] : memref<2x136xf32, #tpu.memory_space<vmem>>, vector<2x12xf32>
    tpu.vector_store %arg2[%c0_7, %c58], %14 {strides = array<i32>} : memref<2x136xf32, #tpu.memory_space<vmem>>, vector<2x12xf32>,
    %16 = vector.extract_strided_slice %0 {offsets = [0, 5, 5], sizes = [2, 1, 11], strides = [1, 1, 1]} : vector<2x16x16xf32> to vector<2x1x11xf32>
    %17 = vector.shape_cast %16 : vector<2x1x11xf32> to vector<2x11xf32>
    %c0_8 = arith.constant 0 : index
    %c70 = arith.constant 70 : index
    %18 = vector.load %arg2[%c0_8, %c70] : memref<2x136xf32, #tpu.memory_space<vmem>>, vector<2x11xf32>
    tpu.vector_store %arg2[%c0_8, %c70], %17 {strides = array<i32>} : memref<2x136xf32, #tpu.memory_space<vmem>>, vector<2x11xf32>,
    %19 = vector.extract_strided_slice %0 {offsets = [0, 6, 6], sizes = [2, 1, 10], strides = [1, 1, 1]} : vector<2x16x16xf32> to vector<2x1x10xf32>
    %20 = vector.shape_cast %19 : vector<2x1x10xf32> to vector<2x10xf32>
    %c0_9 = arith.constant 0 : index
    %c81 = arith.constant 81 : index
    %21 = vector.load %arg2[%c0_9, %c81] : memref<2x136xf32, #tpu.memory_space<vmem>>, vector<2x10xf32>
    tpu.vector_store %arg2[%c0_9, %c81], %20 {strides = array<i32>} : memref<2x136xf32, #tpu.memory_space<vmem>>, vector<2x10xf32>,
    %22 = vector.extract_strided_slice %0 {offsets = [0, 7, 7], sizes = [2, 1, 9], strides = [1, 1, 1]} : vector<2x16x16xf32> to vector<2x1x9xf32>
    %23 = vector.shape_cast %22 : vector<2x1x9xf32> to vector<2x9xf32>
    %c0_10 = arith.constant 0 : index
    %c91 = arith.constant 91 : index
    %24 = vector.load %arg2[%c0_10, %c91] : memref<2x136xf32, #tpu.memory_space<vmem>>, vector<2x9xf32>
    tpu.vector_store %arg2[%c0_10, %c91], %23 {strides = array<i32>} : memref<2x136xf32, #tpu.memory_space<vmem>>, vector<2x9xf32>,
    %25 = vector.extract_strided_slice %0 {offsets = [0, 8, 8], sizes = [2, 1, 8], strides = [1, 1, 1]} : vector<2x16x16xf32> to vector<2x1x8xf32>
    %26 = vector.shape_cast %25 : vector<2x1x8xf32> to vector<2x8xf32>
    %c0_11 = arith.constant 0 : index
    %c100 = arith.constant 100 : index
    %27 = vector.load %arg2[%c0_11, %c100] : memref<2x136xf32, #tpu.memory_space<vmem>>, vector<2x8xf32>
    tpu.vector_store %arg2[%c0_11, %c100], %26 {strides = array<i32>} : memref<2x136xf32, #tpu.memory_space<vmem>>, vector<2x8xf32>,
    %28 = vector.extract_strided_slice %0 {offsets = [0, 9, 9], sizes = [2, 1, 7], strides = [1, 1, 1]} : vector<2x16x16xf32> to vector<2x1x7xf32>
    %29 = vector.shape_cast %28 : vector<2x1x7xf32> to vector<2x7xf32>
    %c0_12 = arith.constant 0 : index
    %c108 = arith.constant 108 : index
    %30 = vector.load %arg2[%c0_12, %c108] : memref<2x136xf32, #tpu.memory_space<vmem>>, vector<2x7xf32>
    tpu.vector_store %arg2[%c0_12, %c108], %29 {strides = array<i32>} : memref<2x136xf32, #tpu.memory_space<vmem>>, vector<2x7xf32>,
    %31 = vector.extract_strided_slice %0 {offsets = [0, 10, 10], sizes = [2, 1, 6], strides = [1, 1, 1]} : vector<2x16x16xf32> to vector<2x1x6xf32>
    %32 = vector.shape_cast %31 : vector<2x1x6xf32> to vector<2x6xf32>
    %c0_13 = arith.constant 0 : index
    %c115 = arith.constant 115 : index
    %33 = vector.load %arg2[%c0_13, %c115] : memref<2x136xf32, #tpu.memory_space<vmem>>, vector<2x6xf32>
    tpu.vector_store %arg2[%c0_13, %c115], %32 {strides = array<i32>} : memref<2x136xf32, #tpu.memory_space<vmem>>, vector<2x6xf32>,
    %34 = vector.extract_strided_slice %0 {offsets = [0, 11, 11], sizes = [2, 1, 5], strides = [1, 1, 1]} : vector<2x16x16xf32> to vector<2x1x5xf32>
    %35 = vector.shape_cast %34 : vector<2x1x5xf32> to vector<2x5xf32>
    %c0_14 = arith.constant 0 : index
    %c121 = arith.constant 121 : index
    %36 = vector.load %arg2[%c0_14, %c121] : memref<2x136xf32, #tpu.memory_space<vmem>>, vector<2x5xf32>
    tpu.vector_store %arg2[%c0_14, %c121], %35 {strides = array<i32>} : memref<2x136xf32, #tpu.memory_space<vmem>>, vector<2x5xf32>,
    %37 = vector.extract_strided_slice %0 {offsets = [0, 12, 12], sizes = [2, 1, 4], strides = [1, 1, 1]} : vector<2x16x16xf32> to vector<2x1x4xf32>
    %38 = vector.shape_cast %37 : vector<2x1x4xf32> to vector<2x4xf32>
    %c0_15 = arith.constant 0 : index
    %c126 = arith.constant 126 : index
    %39 = vector.load %arg2[%c0_15, %c126] : memref<2x136xf32, #tpu.memory_space<vmem>>, vector<2x4xf32>
    tpu.vector_store %arg2[%c0_15, %c126], %38 {strides = array<i32>} : memref<2x136xf32, #tpu.memory_space<vmem>>, vector<2x4xf32>,
    %40 = vector.extract_strided_slice %0 {offsets = [0, 13, 13], sizes = [2, 1, 3], strides = [1, 1, 1]} : vector<2x16x16xf32> to vector<2x1x3xf32>
    %41 = vector.shape_cast %40 : vector<2x1x3xf32> to vector<2x3xf32>
    %c0_16 = arith.constant 0 : index
    %c130 = arith.constant 130 : index
    %42 = vector.load %arg2[%c0_16, %c130] : memref<2x136xf32, #tpu.memory_space<vmem>>, vector<2x3xf32>
    tpu.vector_store %arg2[%c0_16, %c130], %41 {strides = array<i32>} : memref<2x136xf32, #tpu.memory_space<vmem>>, vector<2x3xf32>,
    %43 = vector.extract_strided_slice %0 {offsets = [0, 14, 14], sizes = [2, 1, 2], strides = [1, 1, 1]} : vector<2x16x16xf32> to vector<2x1x2xf32>
    %44 = vector.shape_cast %43 : vector<2x1x2xf32> to vector<2x2xf32>
    %c0_17 = arith.constant 0 : index
    %c133 = arith.constant 133 : index
    %45 = vector.load %arg2[%c0_17, %c133] : memref<2x136xf32, #tpu.memory_space<vmem>>, vector<2x2xf32>
    tpu.vector_store %arg2[%c0_17, %c133], %44 {strides = array<i32>} : memref<2x136xf32, #tpu.memory_space<vmem>>, vector<2x2xf32>,
    %46 = vector.extract_strided_slice %0 {offsets = [0, 15, 15], sizes = [2, 1, 1], strides = [1, 1, 1]} : vector<2x16x16xf32> to vector<2x1x1xf32>
    %47 = vector.shape_cast %46 : vector<2x1x1xf32> to vector<2x1xf32>
    %c0_18 = arith.constant 0 : index
    %c135 = arith.constant 135 : index
    %48 = vector.load %arg2[%c0_18, %c135] : memref<2x136xf32, #tpu.memory_space<vmem>>, vector<2x1xf32>
    tpu.vector_store %arg2[%c0_18, %c135], %47 {strides = array<i32>} : memref<2x136xf32, #tpu.memory_space<vmem>>, vector<2x1xf32>,
    return
  }
  func.func @transform_0(%arg0: i32) -> (i32, i32, i32) {
    %c0_i32 = arith.constant 0 : i32
    %c0_i32_0 = arith.constant 0 : i32
    %c0_i32_1 = arith.constant 0 : i32
    return %arg0, %c0_i32, %c0_i32_0 : i32, i32, i32
  }
  func.func @transform_1(%arg0: i32) -> (i32, i32) {
    %c0_i32 = arith.constant 0 : i32
    %c0_i32_0 = arith.constant 0 : i32
    return %arg0, %c0_i32 : i32, i32
  }
}

</mosaic_0001>

<bundles_post_ra>
// kernel: tpu_custom_call.1
= control target key start
LH: loop header
LB: loop body
LE: loop exit
PB: predicated region body
PF: predicated region fallthrough
CT: control target
= control target key end

     0   :  { %6 = vsyncpa [#allocation3], 0  ;;  %s539_s0 = inlined_call_operand.hbm [shape: f32[2,16,16], index: 0, kind: input, shape index: {}]   ;;  %s540_s1 = inlined_call_operand.hbm [shape: f32[2,136], index: 1, kind: output, shape index: {}]  }
   0x1   :  { %7 = vsyncpa [#allocation4], 0  ;;  %s12_s8 = sshll.u32 %s539_s0, 4  ;;  %s394_s9 = smov [#allocation2]   ;;  %s13_s8 = int_to_ptr.hbm [resolvable:$true] %s12_s8 }
   0x2   :  { %s14_s10 = sshll.u32 %s394_s9, 4  ;;  %s395_s11 = smov 128   ;;  %s15_s10 = int_to_ptr.vmem [resolvable:$true] %s14_s10 }
   0x3   :  { %s396_s12 = smov 8  }
   0x4   :  { %20 = dma.hbm_to_vmem [thread:$0]  %s13_s8, 512, %s15_s10, [#allocation3], %s395_s11, %s395_s11, %s396_s12  }
   0x5   :  { %390 = dma.done.wait [#allocation3], 512  }
   0x6   :  { %391 = vsyncadd [#allocation3], 4294966784  ;;  %v426_v0 = vld [vmem:[#allocation2 + $0x8] sm:$0xff]  ;;  %v428_v1 = vld [vmem:[#allocation2 + $0x18] sm:$0xff]  ;;  %vm36_vm0 = vcmask 1041409   ;;  %vm38_vm1 = vcmask 1043459  }
   0x7   :  { %v430_v2 = vld [vmem:[#allocation2] sm:$0xff]  ;;  %v171_v3 = vrot.slane %v428_v1, 7  ;;  %v433_v4 = vld [vmem:[#allocation2 + $0x10] sm:$0xff]  ;;  %vm40_vm2 = vcmask 1045509   ;;  %vm42_vm3 = vcmask 1047559   ;;  %s397_s0 = smov 92  }
   0x8   :  { %v47_v5 = vrot.slane %v430_v2, 1  ;;  %59 = vst.sshfl [vmem:[#allocation1] sm:$0xff pattern:$0x73625140] %v430_v2  ;;  %s398_s13 = smov 15   ;;  %s399_s14 = smov 29  }
   0x9   :  { %62 = vst.sshfl [vmem:[#allocation1 + $0x20] sm:$0xff pattern:$0x73625140] %v433_v4  ;;  %v172_v6 = vsel %vm36_vm0, %v171_v3, %v426_v0  ;;  %s400_s15 = smov 42   ;;  %v181_v31 = vrot.slane %v426_v0, 1  ;;  %s401_s16 = smov 54  }
   0xa   :  { %v50_v7 = vsel %vm36_vm0, %v433_v4, %v47_v5  ;;  %v173_v8 = vsel %vm38_vm1, %v171_v3, %v172_v6  ;;  %s402_s17 = smov 99   ;;  %s403_s18 = smov 65   ;;  %vm45_vm4 = vcmask 123904   ;;  %vm57_vm5 = vcmask 246912  }
   0xb   :  { %v51_v9 = vsel %vm38_vm1, %v433_v4, %v50_v7  ;;  %v174_v10 = vsel %vm40_vm2, %v171_v3, %v173_v8  ;;  %v184_v33 = vsel %vm36_vm0, %v428_v1, %v181_v31  ;;  %s404_s19 = smov 75   ;;  %s405_s20 = smov 84   ;;  %vm75_vm6 = vcmask 361720  }
   0xc   :  { %v52_v11 = vsel %vm40_vm2, %v433_v4, %v51_v9  ;;  %v175_v12 = vsel %vm42_vm3, %v171_v3, %v174_v10  ;;  %v185_v35 = vsel %vm38_vm1, %v428_v1, %v184_v33  ;;  %s406_s21 = smov 105   ;;  %s407_s22 = smov 110   ;;  %vm93_vm7 = vcmask 468328  }
   0xd   :  { %v53_v13 = vsel %vm42_vm3, %v433_v4, %v52_v11  ;;  %176 = vrot.lane.b32.xlu1 %v175_v12, %s397_s0  ;;  %v186_v37 = vsel %vm40_vm2, %v428_v1, %v185_v35  ;;  %s408_s23 = smov 114   ;;  %s409_s24 = smov 117   ;;  %vm111_vm8 = vcmask 566736   ;;  %vm129_vm9 = vcmask 656944  }
   0xe   :  { %54 = vrot.lane.b32.xlu0 %v53_v13, %s398_s13  ;;  %v187_v39 = vsel %vm42_vm3, %v428_v1, %v186_v37  ;;  %s410_s25 = smov 119   ;;  %s411_s26 = smov 120   ;;  %vm147_vm10 = vcmask 738952   ;;  %vm165_vm11 = vcmask 812760   ;;  %vm179_vm12 = vcmask 878368  }
   0xf   :  { %v61_v14 = vld [vmem:[#allocation1 + $0x1] ss:$4 sm:$0xff]  ;;  %188 = vrot.lane.b32.xlu2 %v187_v39, %s402_s17  ;;  %vm191_vm13 = vcmask 935776   ;;  %vm209_vm14 = vcmask 984984   ;;  %vm227_vm15 = vcmask 1025992   ;;  %s412_s27 = smov [#allocation5]  }
  0x10   :  { %v64_v15 = vld [vmem:[#allocation1 + $0x21] ss:$4 sm:$0xff]  ;;  %77 = vst.sshfl [vmem:[#allocation1] sm:$0xff pattern:$0x73625140] %v430_v2  ;;  %s311_s28 = sshll.u32 %s412_s27, 4  ;;  %s312_s28 = int_to_ptr.vmem [resolvable:$true] %s311_s28 }
  0x11   :  { %80 = vst.sshfl [vmem:[#allocation1 + $0x20] sm:$0xff pattern:$0x73625140] %v433_v4  ;;  %v67_v16 = vrot.slane %v64_v15, 7  ;;  %s313_s2 = sshll.u32 %s540_s1, 4  ;;  %s314_s2 = int_to_ptr.hbm [resolvable:$true] %s313_s2 }
  0x13   :  { %v68_v17 = vsel %vm36_vm0, %v67_v16, %v61_v14 }
  0x14   :  { %v69_v18 = vsel %vm38_vm1, %v67_v16, %v68_v17 }
  0x15   :  { %v70_v19 = vsel %vm40_vm2, %v67_v16, %v69_v18 }
  0x16   :  { %v71_v20 = vsel %vm42_vm3, %v67_v16, %v70_v19 }
  0x17   :  { %v79_v21 = vld [vmem:[#allocation1 + $0x1] ss:$4 sm:$0xff]  ;;  %72 = vrot.lane.b32.xlu0 %v71_v20, %s399_s14 }
  0x18   :  { %v82_v22 = vld [vmem:[#allocation1 + $0x21] ss:$4 sm:$0xff]  ;;  %v83_v23 = vrot.slane %v79_v21, 1  ;;  %95 = vst.sshfl [vmem:[#allocation1] sm:$0xff pattern:$0x73625140] %v430_v2 }
  0x19   :  { %98 = vst.sshfl [vmem:[#allocation1 + $0x20] sm:$0xff pattern:$0x73625140] %v433_v4 }
  0x1a   :  { %v86_v24 = vsel %vm36_vm0, %v82_v22, %v83_v23 }
  0x1b   :  { %v87_v25 = vsel %vm38_vm1, %v82_v22, %v86_v24 }
  0x1c   :  { %v88_v26 = vsel %vm40_vm2, %v82_v22, %v87_v25 }
  0x1d   :  { %v89_v27 = vsel %vm42_vm3, %v82_v22, %v88_v26 }
  0x1e   :  { %90 = vrot.lane.b32.xlu1 %v89_v27, %s400_s15 }
  0x1f   :  { %v97_v28 = vld [vmem:[#allocation1 + $0x2] ss:$4 sm:$0xff] }
  0x20   :  { %v100_v29 = vld [vmem:[#allocation1 + $0x22] ss:$4 sm:$0xff]  ;;  %113 = vst.sshfl [vmem:[#allocation1] sm:$0xff pattern:$0x73625140] %v430_v2 }
  0x21   :  { %v103_v30 = vrot.slane %v100_v29, 7  ;;  %116 = vst.sshfl [vmem:[#allocation1 + $0x20] sm:$0xff pattern:$0x73625140] %v433_v4 }
  0x23   :  { %v104_v32 = vsel %vm36_vm0, %v103_v30, %v97_v28 }
  0x24   :  { %v105_v34 = vsel %vm38_vm1, %v103_v30, %v104_v32  ;;  %v35_v32 = vrot.slane %v433_v4, 7 }
  0x25   :  { %v106_v36 = vsel %vm40_vm2, %v103_v30, %v105_v34 }
  0x26   :  { %v107_v38 = vsel %vm42_vm3, %v103_v30, %v106_v36  ;;  %v37_v34 = vsel %vm36_vm0, %v35_v32, %v430_v2 }
  0x27   :  { %v115_v40 = vld [vmem:[#allocation1 + $0x2] ss:$4 sm:$0xff]  ;;  %108 = vrot.lane.b32.xlu1 %v107_v38, %s401_s16  ;;  %v39_v36 = vsel %vm38_vm1, %v35_v32, %v37_v34 }
  0x28   :  { %v118_v41 = vld [vmem:[#allocation1 + $0x22] ss:$4 sm:$0xff]  ;;  %131 = vst.sshfl [vmem:[#allocation1] sm:$0xff pattern:$0x73625140] %v430_v2  ;;  %v119_v42 = vrot.slane %v115_v40, 1  ;;  %v41_v38 = vsel %vm40_vm2, %v35_v32, %v39_v36 }
  0x29   :  { %134 = vst.sshfl [vmem:[#allocation1 + $0x20] sm:$0xff pattern:$0x73625140] %v433_v4 }
  0x2a   :  { %v122_v43 = vsel %vm36_vm0, %v118_v41, %v119_v42 }
  0x2b   :  { %v123_v44 = vsel %vm38_vm1, %v118_v41, %v122_v43 }
  0x2c   :  { %v124_v45 = vsel %vm40_vm2, %v118_v41, %v123_v44 }
  0x2d   :  { %v125_v46 = vsel %vm42_vm3, %v118_v41, %v124_v45 }
  0x2e   :  { %126 = vrot.lane.b32.xlu2 %v125_v46, %s403_s18 }
  0x2f   :  { %v133_v47 = vld [vmem:[#allocation1 + $0x3] ss:$4 sm:$0xff] }
  0x30   :  { %v136_v48 = vld [vmem:[#allocation1 + $0x23] ss:$4 sm:$0xff]  ;;  %149 = vst.sshfl [vmem:[#allocation1] sm:$0xff pattern:$0x73625140] %v430_v2 }
  0x31   :  { %152 = vst.sshfl [vmem:[#allocation1 + $0x20] sm:$0xff pattern:$0x73625140] %v433_v4  ;;  %v139_v50 = vrot.slane %v136_v48, 7 }
  0x33   :  { %v140_v53 = vsel %vm36_vm0, %v139_v50, %v133_v47 }
  0x34   :  { %v141_v55 = vsel %vm38_vm1, %v139_v50, %v140_v53 }
  0x35   :  { %v142_v57 = vsel %vm40_vm2, %v139_v50, %v141_v55 }
  0x36   :  { %v143_v59 = vsel %vm42_vm3, %v139_v50, %v142_v57 }
  0x37   :  { %v151_v49 = vld [vmem:[#allocation1 + $0x3] ss:$4 sm:$0xff]  ;;  %144 = vrot.lane.b32.xlu2 %v143_v59, %s404_s19 }
  0x38   :  { %v154_v51 = vld [vmem:[#allocation1 + $0x23] ss:$4 sm:$0xff]  ;;  %v155_v52 = vrot.slane %v151_v49, 1  ;;  %193 = vst.sshfl [vmem:[#allocation1] sm:$0xff pattern:$0x73625140] %v426_v0 }
  0x39   :  { %196 = vst.sshfl [vmem:[#allocation1 + $0x20] sm:$0xff pattern:$0x73625140] %v428_v1 }
  0x3a   :  { %v158_v54 = vsel %vm36_vm0, %v154_v51, %v155_v52 }
  0x3b   :  { %v159_v56 = vsel %vm38_vm1, %v154_v51, %v158_v54 }
  0x3c   :  { %v160_v58 = vsel %vm40_vm2, %v154_v51, %v159_v56 }
  0x3d   :  { %v161_v60 = vsel %vm42_vm3, %v154_v51, %v160_v58 }
  0x3e   :  { %162 = vrot.lane.b32.xlu0 %v161_v60, %s405_s20 }
  0x3f   :  { %v195_v61 = vld [vmem:[#allocation1 + $0x1] ss:$4 sm:$0xff] }
  0x40   :  { %v198_v62 = vld [vmem:[#allocation1 + $0x21] ss:$4 sm:$0xff]  ;;  %211 = vst.sshfl [vmem:[#allocation1] sm:$0xff pattern:$0x73625140] %v426_v0 }
  0x41   :  { %214 = vst.sshfl [vmem:[#allocation1 + $0x20] sm:$0xff pattern:$0x73625140] %v428_v1  ;;  %v201_v63 = vrot.slane %v198_v62, 7 }
  0x43   :  { %v202_v3 = vsel %vm36_vm0, %v201_v63, %v195_v61 }
  0x44   :  { %v203_v5 = vsel %vm38_vm1, %v201_v63, %v202_v3 }
  0x45   :  { %v204_v6 = vsel %vm40_vm2, %v201_v63, %v203_v5 }
  0x46   :  { %v205_v7 = vsel %vm42_vm3, %v201_v63, %v204_v6 }
  0x47   :  { %v213_v8 = vld [vmem:[#allocation1 + $0x1] ss:$4 sm:$0xff]  ;;  %206 = vrot.lane.b32.xlu1 %v205_v7, %s406_s21 }
  0x48   :  { %v216_v9 = vld [vmem:[#allocation1 + $0x21] ss:$4 sm:$0xff]  ;;  %229 = vst.sshfl [vmem:[#allocation1] sm:$0xff pattern:$0x73625140] %v426_v0  ;;  %v217_v10 = vrot.slane %v213_v8, 1 }
  0x49   :  { %232 = vst.sshfl [vmem:[#allocation1 + $0x20] sm:$0xff pattern:$0x73625140] %v428_v1 }
  0x4a   :  { %v220_v11 = vsel %vm36_vm0, %v216_v9, %v217_v10 }
  0x4b   :  { %v221_v12 = vsel %vm38_vm1, %v216_v9, %v220_v11 }
  0x4c   :  { %v222_v13 = vsel %vm40_vm2, %v216_v9, %v221_v12 }
  0x4d   :  { %v223_v14 = vsel %vm42_vm3, %v216_v9, %v222_v13 }
  0x4e   :  { %224 = vrot.lane.b32.xlu2 %v223_v14, %s407_s22 }
  0x4f   :  { %v231_v15 = vld [vmem:[#allocation1 + $0x2] ss:$4 sm:$0xff] }
  0x50   :  { %v234_v16 = vld [vmem:[#allocation1 + $0x22] ss:$4 sm:$0xff]  ;;  %252 = vst.sshfl [vmem:[#allocation1] sm:$0xff pattern:$0x73625140] %v426_v0 }
  0x51   :  { %v237_v17 = vrot.slane %v234_v16, 7  ;;  %255 = vst.sshfl [vmem:[#allocation1 + $0x20] sm:$0xff pattern:$0x73625140] %v428_v1 }
  0x53   :  { %v238_v18 = vsel %vm36_vm0, %v237_v17, %v231_v15 }
  0x54   :  { %v239_v19 = vsel %vm38_vm1, %v237_v17, %v238_v18 }
  0x55   :  { %v240_v20 = vsel %vm40_vm2, %v237_v17, %v239_v19 }
  0x56   :  { %v241_v21 = vsel %vm42_vm3, %v237_v17, %v240_v20 }
  0x57   :  { %242 = vrot.lane.b32.xlu0 %v241_v21, %s408_s23  ;;  %v254_v22 = vld [vmem:[#allocation1 + $0x2] ss:$4 sm:$0xff] }
  0x58   :  { %v257_v23 = vld [vmem:[#allocation1 + $0x22] ss:$4 sm:$0xff]  ;;  %v258_v24 = vrot.slane %v254_v22, 1  ;;  %270 = vst.sshfl [vmem:[#allocation1] sm:$0xff pattern:$0x73625140] %v426_v0 }
  0x59   :  { %273 = vst.sshfl [vmem:[#allocation1 + $0x20] sm:$0xff pattern:$0x73625140] %v428_v1 }
  0x5a   :  { %v261_v25 = vsel %vm36_vm0, %v257_v23, %v258_v24 }
  0x5b   :  { %v262_v26 = vsel %vm38_vm1, %v257_v23, %v261_v25 }
  0x5c   :  { %v263_v27 = vsel %vm40_vm2, %v257_v23, %v262_v26 }
  0x5d   :  { %v264_v28 = vsel %vm42_vm3, %v257_v23, %v263_v27 }
  0x5f   :  { %265 = vrot.lane.b32.xlu0 %v264_v28, %s409_s24  ;;  %v272_v29 = vld [vmem:[#allocation1 + $0x3] ss:$4 sm:$0xff] }
  0x60   :  { %v275_v30 = vld [vmem:[#allocation1 + $0x23] ss:$4 sm:$0xff]  ;;  %288 = vst.sshfl [vmem:[#allocation1] sm:$0xff pattern:$0x73625140] %v426_v0 }
  0x61   :  { %v278_v31 = vrot.slane %v275_v30, 7  ;;  %291 = vst.sshfl [vmem:[#allocation1 + $0x20] sm:$0xff pattern:$0x73625140] %v428_v1  ;;  %v43_v1 = vsel %vm42_vm3, %v35_v32, %v41_v38 }
  0x62   :  { %46 = vst.msk [vmem:[#allocation5] sm:$0x3] %vm45_vm4, %v43_v1  ;;  %vm268_vm4 = vcmask 33808  }
  0x63   :  { %v279_v33 = vsel %vm36_vm0, %v278_v31, %v272_v29 }
  0x64   :  { %v280_v35 = vsel %vm38_vm1, %v278_v31, %v279_v33 }
  0x65   :  { %v281_v37 = vsel %vm40_vm2, %v278_v31, %v280_v35 }
  0x66   :  { %v282_v0 = vsel %vm42_vm3, %v278_v31, %v281_v37 }
  0x67   :  { %283 = vrot.lane.b32.xlu1 %v282_v0, %s410_s25  ;;  %v290_v4 = vld [vmem:[#allocation1 + $0x3] ss:$4 sm:$0xff] }
  0x68   :  { %v293_v39 = vld [vmem:[#allocation1 + $0x23] ss:$4 sm:$0xff]  ;;  %v294_v40 = vrot.slane %v290_v4, 1 }
  0x69   :  { %v189_v45 = vpop.permute.xlu2 %188 }
  0x6a   :  { %v297_v2 = vsel %vm36_vm0, %v293_v39, %v294_v40  ;;  %vm248_vm0 = vcmask 1042416  }
  0x6b   :  { %v298_v41 = vsel %vm38_vm1, %v293_v39, %v297_v2  ;;  %vm249_vm1 = vcmask 11266  }
  0x6c   :  { %v299_v42 = vsel %vm40_vm2, %v293_v39, %v298_v41  ;;  %vm245_vm2 = vcmask 932864  }
  0x6d   :  { %v300_v43 = vsel %vm42_vm3, %v293_v39, %v299_v42  ;;  %vm250_vm3 = vmor %vm249_vm1, %vm248_vm0 }
  0x6e   :  { %301 = vrot.lane.b32.xlu2 %v300_v43, %s411_s26 }
  0x7f   :  { %v177_v46 = vpop.permute.xlu1 %176 }
  0x80   :  { %v55_v44 = vpop.permute.xlu0 %54 }
  0x81   :  { %58 = vst.msk [vmem:[#allocation5] sm:$0x3] %vm57_vm5, %v55_v44  ;;  %vm286_vm5 = vcmask 50216  }
  0x88   :  { %v127_v48 = vpop.permute.xlu2 %126 }
  0x89   :  { %v73_v47 = vpop.permute.xlu0 %72 }
  0x8a   :  { %76 = vst.msk [vmem:[#allocation5] sm:$0x3] %vm75_vm6, %v73_v47  ;;  %vm304_vm6 = vcmask 58424  }
  0x90   :  { %v91_v49 = vpop.permute.xlu1 %90 }
  0x91   :  { %94 = vst.msk [vmem:[#allocation5] sm:$0x3] %vm93_vm7, %v91_v49  ;;  %v145_v51 = vpop.permute.xlu2 %144 }
  0x99   :  { %v109_v50 = vpop.permute.xlu1 %108 }
  0x9a   :  { %112 = vst.msk [vmem:[#allocation5] sm:$0x3] %vm111_vm8, %v109_v50 }
  0x9b   :  { %130 = vst.msk [vmem:[#allocation5] sm:$0x3] %vm129_vm9, %v127_v48 }
  0x9c   :  { %148 = vst.msk [vmem:[#allocation5] sm:$0x3] %vm147_vm10, %v145_v51 }
  0xa8   :  { %v225_v53 = vpop.permute.xlu2 %224 }
  0xb0   :  { %v163_v52 = vpop.permute.xlu0 %162 }
  0xb1   :  { %166 = vst.msk [vmem:[#allocation5] sm:$0x3] %vm165_vm11, %v163_v52 }
  0xb2   :  { %180 = vst.msk [vmem:[#allocation5] sm:$0x3] %vm179_vm12, %v177_v46 }
  0xb3   :  { %192 = vst.msk [vmem:[#allocation5] sm:$0x3] %vm191_vm13, %v189_v45 }
  0xb9   :  { %v207_v54 = vpop.permute.xlu1 %206 }
  0xba   :  { %210 = vst.msk [vmem:[#allocation5] sm:$0x3] %vm209_vm14, %v207_v54 }
  0xbb   :  { %228 = vst.msk [vmem:[#allocation5] sm:$0x3] %vm227_vm15, %v225_v53 }
  0xc8   :  { %v302_v59 = vpop.permute.xlu2 %301 }
  0xc9   :  { %v243_v55 = vpop.permute.xlu0 %242 }
  0xca   :  { %v244_v56 = vrot.slane %v243_v55, 6 }
  0xcc   :  { %v246_v57 = vsel %vm245_vm2, %v244_v56, %v243_v55 }
  0xcd   :  { %251 = vst.msk [vmem:[#allocation5] sm:$0xf] %vm250_vm3, %v246_v57 }
  0xd1   :  { %v266_v58 = vpop.permute.xlu0 %265 }
  0xd2   :  { %269 = vst.msk [vmem:[#allocation5 + $0x2] sm:$0x3] %vm268_vm4, %v266_v58 }
  0xd9   :  { %v284_v60 = vpop.permute.xlu1 %283 }
  0xda   :  { %287 = vst.msk [vmem:[#allocation5 + $0x2] sm:$0x3] %vm286_vm5, %v284_v60 }
  0xdb   :  { %305 = vst.msk [vmem:[#allocation5 + $0x2] sm:$0x3] %vm304_vm6, %v302_v59 }
  0xdc   :  { %316 = dma.vmem_to_hbm [thread:$0]  %s312_s28, 64, %s314_s2, [#allocation4]  }
  0xdd   :  { %392 = dma.done.wait [#allocation4], 64  }
  0xde   :  { %393 = vsyncadd [#allocation4], 4294967232 }
  0xdf   :  { %321 = vsyncpa [#allocation3], 1 }
  0xe0   :  { %322 = vsyncpa [#allocation4], 1 }

</bundles_post_ra>
